<compile_context>
chip_gen: v5e
topology: v5e:2x2
jax: 0.10.0
libtpu: 0.0.40
codegen_flags: <defaults>
</compile_context>

<pallas_src>
import numpy as np
import jax
import jax.numpy as jnp
from jax.experimental import pallas as pl
from jax.experimental.pallas import tpu as pltpu


# ---------------------------------------------------------------------------
# Kernel 1 (init-time, runs once): Linear -> SiLU -> Linear over the table,
# tiled over rows so it scales to production-sized (L, D).
# ---------------------------------------------------------------------------
def _mlp_silu_kernel(x_ref, w1_ref, b1_ref, w2_ref, b2_ref, o_ref):
    # x_ref : (tm, D)   w1_ref/w2_ref : (D, D)   b1_ref/b2_ref : (1, D)
    x = x_ref[...]
    h = jnp.dot(x, w1_ref[...], preferred_element_type=jnp.float32) + b1_ref[...]
    h = h * jax.nn.sigmoid(h)                     # SiLU
    y = jnp.dot(h, w2_ref[...], preferred_element_type=jnp.float32) + b2_ref[...]
    o_ref[...] = y.astype(o_ref.dtype)


def time_embed_table_pallas(pe_flat, w1, b1, w2, b2, row_block=256):
    """pe_flat: (L, D) f32. Returns (L, D) f32 = Linear->SiLU->Linear(pe_flat)."""
    L, D = pe_flat.shape
    # Whole table if small; otherwise 256-row tiles (multiple of 8 sublanes).
    tm = L if L <= row_block else row_block
    grid = (pl.cdiv(L, tm),)
    return pl.pallas_call(
        _mlp_silu_kernel,
        out_shape=jax.ShapeDtypeStruct((L, D), jnp.float32),
        grid=grid,
        in_specs=[
            pl.BlockSpec((tm, D), lambda i: (i, 0)),   # row tile
            pl.BlockSpec((D, D), lambda i: (0, 0)),    # w1 (resident)
            pl.BlockSpec((1, D), lambda i: (0, 0)),    # b1
            pl.BlockSpec((D, D), lambda i: (0, 0)),    # w2
            pl.BlockSpec((1, D), lambda i: (0, 0)),    # b2
        ],
        out_specs=pl.BlockSpec((tm, D), lambda i: (i, 0)),
        compiler_params=pltpu.CompilerParams(
            dimension_semantics=("parallel",)),
    )(pe_flat, w1, b1, w2, b2)


# ---------------------------------------------------------------------------
# Kernel 2 (per-forward): single-step gather of precomputed rows -> (B, D)
# ---------------------------------------------------------------------------
def _gather_kernel(ts_ref, table_ref, o_ref):
    # ts_ref   : (B,) int32 in SMEM (scalar-prefetched timesteps)
    # table_ref: (L, D) f32, whole precomputed table resident in VMEM
    # o_ref    : (B, D) f32 output block (dense, single store region)
    B = o_ref.shape[0]
    for b in range(B):                                  # static, unrolled
        row = table_ref[pl.ds(ts_ref[b], 1), :]         # (1, D) dynamic row
        o_ref[pl.ds(b, 1), :] = row


def gather_embedded_pallas(timesteps, table2d):
    """timesteps: (B,) int32; table2d: (max_len, D) f32 -> (B, D) f32."""
    B = timesteps.shape[0]
    L, D = table2d.shape
    grid_spec = pltpu.PrefetchScalarGridSpec(
        num_scalar_prefetch=1,
        grid=(1,),  # one step: table fetched once, all B rows gathered in-kernel
        in_specs=[
            pl.BlockSpec((L, D), lambda i, ts: (0, 0)),   # constant index_map
        ],
        out_specs=pl.BlockSpec((B, D), lambda i, ts: (0, 0)),
    )
    return pl.pallas_call(
        _gather_kernel,
        out_shape=jax.ShapeDtypeStruct((B, D), jnp.float32),
        grid_spec=grid_spec,
        compiler_params=pltpu.CompilerParams(
            dimension_semantics=("arbitrary",)),
    )(timesteps, table2d)


# ---------------------------------------------------------------------------
# Module-equivalent wrapper
# ---------------------------------------------------------------------------
def make_sinusoidal_pe(max_len, d_model):
    """Standard MDM PositionalEncoding table, shape (max_len, 1, d_model)."""
    position = np.arange(max_len, dtype=np.float32)[:, None]
    div_term = np.exp(np.arange(0, d_model, 2, dtype=np.float32)
                      * (-np.log(10000.0) / d_model))
    pe = np.zeros((max_len, d_model), dtype=np.float32)
    pe[:, 0::2] = np.sin(position * div_term)
    pe[:, 1::2] = np.cos(position * div_term)
    return jnp.asarray(pe[:, None, :])  # (max_len, 1, d_model)


class IdentityEmbedderPallas:
    def __init__(self, latent_dim, pe, key):
        self.latent_dim = latent_dim
        self.pe = pe  # (max_len, 1, latent_dim)
        self.max_len = pe.shape[0]
        k1, k2, k3, k4 = jax.random.split(key, 4)
        bound = 1.0 / np.sqrt(latent_dim)
        # Deterministic synthetic weights (PyTorch-Linear-style uniform init).
        # Stored as (in, out) so the kernel computes x @ W + b.
        # NOTE: PyTorch nn.Linear stores weight as (out, in); real checkpoints
        # must be transposed before being loaded here.
        self.w1 = jax.random.uniform(k1, (latent_dim, latent_dim), jnp.float32, -bound, bound)
        self.b1 = jax.random.uniform(k2, (1, latent_dim), jnp.float32, -bound, bound)
        self.w2 = jax.random.uniform(k3, (latent_dim, latent_dim), jnp.float32, -bound, bound)
        self.b2 = jax.random.uniform(k4, (1, latent_dim), jnp.float32, -bound, bound)

        # Precompute time_embed(pe[t]) for every timestep t, once.
        # NOTE: must be recomputed if pe or the MLP weights ever change.
        pe_flat = pe.reshape(self.max_len, latent_dim).astype(jnp.float32)  # (L, D)
        self.pe_embedded = time_embed_table_pallas(
            pe_flat, self.w1, self.b1, self.w2, self.b2)                    # (L, D)

    def __call__(self, timesteps):
        # Clamp: data-dependent VMEM indexing has no runtime bounds check on TPU.
        ts = jnp.clip(timesteps.astype(jnp.int32), 0, self.max_len - 1)
        out2d = gather_embedded_pallas(ts, self.pe_embedded)        # (B, D)
        # unsqueeze(1) + the pe row dim -> (B, 1, 1, D); free metadata reshape.
        # TODO(synk): at these sizes the ideal is fusing this gather into the
        # downstream consumer kernel via scalar prefetch; standalone launch
        # cost dominates the ~256 bytes moved.
        return out2d.reshape(out2d.shape[0], 1, 1, self.latent_dim)


def _reference_forward(pe, timesteps, w1, b1, w2, b2):
    x = pe[timesteps]                               # (B, 1, D)
    h = x @ w1 + b1
    h = h * jax.nn.sigmoid(h)
    y = h @ w2 + b2                                 # (B, 1, D)
    return y[:, None, :, :]                         # (B, 1, 1, D)


if __name__ == "__main__":
    latent_dim = 32
    max_len = 64
    batch = 2

    key = jax.random.PRNGKey(0)
    k_w, k_t = jax.random.split(key)

    pe = make_sinusoidal_pe(max_len, latent_dim)
    embedder = IdentityEmbedderPallas(latent_dim, pe, k_w)

    timesteps = jax.random.randint(k_t, (batch,), 0, max_len, dtype=jnp.int32)

    out = embedder(timesteps)
    out = jax.block_until_ready(out)

    # Sanity check against a pure-JAX reference of the original forward pass.
    ref = _reference_forward(pe, timesteps, embedder.w1, embedder.b1,
                             embedder.w2, embedder.b2)

    assert out.shape == (batch, 1, 1, latent_dim), out.shape
    np.testing.assert_allclose(np.asarray(out), np.asarray(ref), rtol=1e-4, atol=1e-4)

    print("KERNEL_OK")
</pallas_src>

<mosaic_0001>
module attributes {stable_mosaic.version = 11 : i64} {
  func.func @_mlp_silu_kernel(%arg0: i32, %arg1: memref<64x32xf32, #tpu.memory_space<vmem>>, %arg2: memref<32x32xf32, #tpu.memory_space<vmem>>, %arg3: memref<1x32xf32, #tpu.memory_space<vmem>>, %arg4: memref<32x32xf32, #tpu.memory_space<vmem>>, %arg5: memref<1x32xf32, #tpu.memory_space<vmem>>, %arg6: memref<64x32xf32, #tpu.memory_space<vmem>>) attributes {dimension_semantics = [#tpu.dimension_semantics<parallel>], iteration_bounds = array<i64: 1>, scalar_prefetch = 0 : i64, scratch_operands = 0 : i64, tpu.core_type = #tpu.core_type<tc>, window_params = [{transform_indices = @transform_0, window_bounds = array<i64: 64, 32>}, {pipeline_mode = #tpu.pipeline_mode<synchronous>, transform_indices = @transform_1, window_bounds = array<i64: 32, 32>}, {pipeline_mode = #tpu.pipeline_mode<synchronous>, transform_indices = @transform_2, window_bounds = array<i64: 1, 32>}, {pipeline_mode = #tpu.pipeline_mode<synchronous>, transform_indices = @transform_3, window_bounds = array<i64: 32, 32>}, {pipeline_mode = #tpu.pipeline_mode<synchronous>, transform_indices = @transform_4, window_bounds = array<i64: 1, 32>}, {transform_indices = @transform_5, window_bounds = array<i64: 64, 32>}]} {
    %c0 = arith.constant 0 : index
    %c0_0 = arith.constant 0 : index
    %0 = vector.load %arg1[%c0, %c0_0] : memref<64x32xf32, #tpu.memory_space<vmem>>, vector<64x32xf32>
    %c0_1 = arith.constant 0 : index
    %c0_2 = arith.constant 0 : index
    %1 = vector.load %arg2[%c0_1, %c0_2] : memref<32x32xf32, #tpu.memory_space<vmem>>, vector<32x32xf32>
    %cst = arith.constant dense<0.000000e+00> : vector<64x32xf32>
    %2 = tpu.matmul %0, %1, %cst {dimension_numbers = #tpu.dot_dimension_numbers<[1], [0], [0], [1], [0, 0, 1, 1], [], []>} : vector<64x32xf32>, vector<32x32xf32>, vector<64x32xf32> -> vector<64x32xf32>
    %c0_3 = arith.constant 0 : index
    %c0_4 = arith.constant 0 : index
    %3 = vector.load %arg3[%c0_3, %c0_4] : memref<1x32xf32, #tpu.memory_space<vmem>>, vector<1x32xf32>
    %4 = vector.broadcast %3 : vector<1x32xf32> to vector<64x32xf32>
    %5 = arith.addf %2, %4 : vector<64x32xf32>
    %6 = arith.negf %5 : vector<64x32xf32>
    %7 = math.exp %6 : vector<64x32xf32>
    %cst_5 = arith.constant 1.000000e+00 : f32
    %8 = vector.broadcast %cst_5 : f32 to vector<64x32xf32>
    %9 = arith.addf %8, %7 : vector<64x32xf32>
    %10 = arith.divf %8, %9 : vector<64x32xf32>
    %11 = arith.mulf %5, %10 : vector<64x32xf32>
    %c0_6 = arith.constant 0 : index
    %c0_7 = arith.constant 0 : index
    %12 = vector.load %arg4[%c0_6, %c0_7] : memref<32x32xf32, #tpu.memory_space<vmem>>, vector<32x32xf32>
    %cst_8 = arith.constant dense<0.000000e+00> : vector<64x32xf32>
    %13 = tpu.matmul %11, %12, %cst_8 {dimension_numbers = #tpu.dot_dimension_numbers<[1], [0], [0], [1], [0, 0, 1, 1], [], []>} : vector<64x32xf32>, vector<32x32xf32>, vector<64x32xf32> -> vector<64x32xf32>
    %c0_9 = arith.constant 0 : index
    %c0_10 = arith.constant 0 : index
    %14 = vector.load %arg5[%c0_9, %c0_10] : memref<1x32xf32, #tpu.memory_space<vmem>>, vector<1x32xf32>
    %15 = vector.broadcast %14 : vector<1x32xf32> to vector<64x32xf32>
    %16 = arith.addf %13, %15 : vector<64x32xf32>
    %c0_11 = arith.constant 0 : index
    %c0_12 = arith.constant 0 : index
    %17 = vector.load %arg6[%c0_11, %c0_12] : memref<64x32xf32, #tpu.memory_space<vmem>>, vector<64x32xf32>
    tpu.vector_store %arg6[%c0_11, %c0_12], %16 {strides = array<i32>} : memref<64x32xf32, #tpu.memory_space<vmem>>, vector<64x32xf32>,
    return
  }
  func.func @transform_0(%arg0: i32) -> (i32, i32) {
    %c0_i32 = arith.constant 0 : i32
    %c0_i32_0 = arith.constant 0 : i32
    return %arg0, %c0_i32 : i32, i32
  }
  func.func @transform_1(%arg0: i32) -> (i32, i32) {
    %c0_i32 = arith.constant 0 : i32
    %c0_i32_0 = arith.constant 0 : i32
    %c0_i32_1 = arith.constant 0 : i32
    return %c0_i32, %c0_i32_0 : i32, i32
  }
  func.func @transform_2(%arg0: i32) -> (i32, i32) {
    %c0_i32 = arith.constant 0 : i32
    %c0_i32_0 = arith.constant 0 : i32
    %c0_i32_1 = arith.constant 0 : i32
    return %c0_i32, %c0_i32_0 : i32, i32
  }
  func.func @transform_3(%arg0: i32) -> (i32, i32) {
    %c0_i32 = arith.constant 0 : i32
    %c0_i32_0 = arith.constant 0 : i32
    %c0_i32_1 = arith.constant 0 : i32
    return %c0_i32, %c0_i32_0 : i32, i32
  }
  func.func @transform_4(%arg0: i32) -> (i32, i32) {
    %c0_i32 = arith.constant 0 : i32
    %c0_i32_0 = arith.constant 0 : i32
    %c0_i32_1 = arith.constant 0 : i32
    return %c0_i32, %c0_i32_0 : i32, i32
  }
  func.func @transform_5(%arg0: i32) -> (i32, i32) {
    %c0_i32 = arith.constant 0 : i32
    %c0_i32_0 = arith.constant 0 : i32
    return %arg0, %c0_i32 : i32, i32
  }
}

</mosaic_0001>

<bundles_post_ra>
// kernel: tpu_custom_call.1
= control target key start
LH: loop header
LB: loop body
LE: loop exit
PB: predicated region body
PF: predicated region fallthrough
CT: control target
= control target key end

     0   :  { %vm36_vm0 = vcmask 261120   ;;  %s636_s1 = inlined_call_operand.vmem [shape: f32[32,32], index: 1, kind: input, shape index: {}]   ;;  %s637_s0 = inlined_call_operand.vmem [shape: f32[64,32], index: 0, kind: input, shape index: {}]   ;;  %s638_s2 = inlined_call_operand.vmem [shape: f32[1,32], index: 2, kind: input, shape index: {}]   ;;  %s639_s4 = inlined_call_operand.vmem [shape: f32[1,32], index: 4, kind: input, shape index: {}]   ;;  %s640_s3 = inlined_call_operand.vmem [shape: f32[32,32], index: 3, kind: input, shape index: {}]   ;;  %s641_s5 = inlined_call_operand.vmem [shape: f32[64,32], index: 5, kind: output, shape index: {}]  }
   0x1   :  { %v31_v0 = vld [vmem:[%s636_s1 + $0x18] sm:$0xff]  ;;  %v30_v1 = vld [vmem:[%s636_s1 + $0x10] sm:$0xff]  ;;  %v29_v2 = vld [vmem:[%s636_s1 + $0x8] sm:$0xff] }
   0x2   :  { %73 = vmatpush.msra.mxu0 %v31_v0  ;;  %371 = vmatpush.msra.mxu2 %v31_v0  ;;  %v28_v3 = vld [vmem:[%s636_s1] sm:$0xff]  ;;  %v21_v6 = vld [vmem:[%s637_s0 + $0x8] sm:$0xff]  ;;  %v22_v8 = vld [vmem:[%s637_s0 + $0x10] sm:$0xff] }
   0x3   :  { %v20_v4 = vld [vmem:[%s637_s0] sm:$0xff]  ;;  %v25_v7 = vld [vmem:[%s637_s0 + $0x28] sm:$0xff]  ;;  %v26_v9 = vld [vmem:[%s637_s0 + $0x30] sm:$0xff] }
   0x4   :  { %74 = vmatpush.msra.mxu0 %v30_v1  ;;  %372 = vmatpush.msra.mxu2 %v30_v1  ;;  %v24_v5 = vld [vmem:[%s637_s0 + $0x20] sm:$0xff]  ;;  %v23_v10 = vld [vmem:[%s637_s0 + $0x18] sm:$0xff]  ;;  %v264_v14 = vld [vmem:[%s640_s3 + $0x10] sm:$0xff] }
   0x5   :  { %v27_v11 = vld [vmem:[%s637_s0 + $0x38] sm:$0xff]  ;;  %v490_v12 = vld [vmem:[%s638_s2] ss:$0 sm:$0xff]  ;;  %v263_v17 = vld [vmem:[%s640_s3 + $0x8] sm:$0xff] }
   0x6   :  { %75 = vmatpush.msra.mxu0 %v29_v2  ;;  %373 = vmatpush.msra.mxu2 %v29_v2  ;;  %v265_v13 = vld [vmem:[%s640_s3 + $0x18] sm:$0xff]  ;;  %v262_v19 = vld [vmem:[%s640_s3] sm:$0xff] }
   0x7   :  { %306 = vmatpush.msra.mxu1 %v265_v13  ;;  %375 = vmatpush.msra.mxu3 %v265_v13 }
   0x8   :  { %76 = vmatpush.msra.mxu0 %v28_v3  ;;  %374 = vmatpush.msra.mxu2 %v28_v3 }
   0x9   :  { %347 = vmatmul.msk.f32.vlgmr.msra.gmra.mxu0 %vm36_vm0, %v20_v4  ;;  %351 = vmatmul.msk.f32.vlgmr.msra.gmra.mxu2 %vm36_vm0, %v24_v5 }
   0xa   :  { %307 = vmatpush.msra.mxu1 %v264_v14  ;;  %376 = vmatpush.msra.mxu3 %v264_v14 }
   0xc   :  { %308 = vmatpush.msra.mxu1 %v263_v17  ;;  %377 = vmatpush.msra.mxu3 %v263_v17 }
   0xe   :  { %309 = vmatpush.msra.mxu1 %v262_v19  ;;  %378 = vmatpush.msra.mxu3 %v262_v19 }
  0x11   :  { %348 = vmatmul.msk.f32.gmra.mxu0 %vm36_vm0, %v21_v6  ;;  %352 = vmatmul.msk.f32.gmra.mxu2 %vm36_vm0, %v25_v7 }
  0x19   :  { %349 = vmatmul.msk.f32.gmra.mxu0 %vm36_vm0, %v22_v8  ;;  %353 = vmatmul.msk.f32.gmra.mxu2 %vm36_vm0, %v26_v9 }
  0x21   :  { %350 = vmatmul.msk.f32.gmra.mxu0 %vm36_vm0, %v23_v10  ;;  %354 = vmatmul.msk.f32.gmra.mxu2 %vm36_vm0, %v27_v11 }
  0x86   :  { %v78_v15 = vpop.f32.mrf.mxu0 }
  0x87   :  { %v499_v16 = vadd.f32 %v490_v12, %v78_v15 }
  0x89   :  { %v355_v18 = vmul.f32 -1.442695, %v499_v16 }
  0x8b   :  { %381 = vpow2.f32 %v355_v18 }
  0x8c   :  { %v90_v20 = vpop.f32.mrf.mxu2 }
  0x8d   :  { %v509_v21 = vadd.f32 %v490_v12, %v90_v20 }
  0x8e   :  { %v81_v22 = vpop.f32.mrf.mxu0 }
  0x8f   :  { %v359_v23 = vmul.f32 -1.442695, %v509_v21  ;;  %v513_v24 = vadd.f32 %v490_v12, %v81_v22 }
  0x91   :  { %v382_v25 = vpop.eup %381  ;;  %383 = vpow2.f32 %v359_v23  ;;  %v356_v26 = vmul.f32 -1.442695, %v513_v24 }
  0x92   :  { %v126_v27 = vadd.f32 1.0, %v382_v25 }
  0x93   :  { %385 = vpow2.f32 %v356_v26 }
  0x94   :  { %387 = vrcp.f32 %v126_v27  ;;  %v93_v28 = vpop.f32.mrf.mxu2  ;;  %vm139_vm1 = vweird.f32 %v126_v27  ;;  %v145_v40 = vand.u32 2147483648, %v126_v27  ;;  %v143_v43 = vand.u32 2147483647, %v126_v27 }
  0x95   :  { %v517_v29 = vadd.f32 %v490_v12, %v93_v28 }
  0x96   :  { %v84_v30 = vpop.f32.mrf.mxu0  ;;  %v146_v51 = vor.u32 1.1754944e-38, %v145_v40  ;;  %vm144_vm4 = vcmp.eq.f32.partialorder %v143_v43, 8.507059e+37 }
  0x97   :  { %v384_v31 = vpop.eup %383  ;;  %v360_v32 = vmul.f32 -1.442695, %v517_v29  ;;  %v521_v33 = vadd.f32 %v490_v12, %v84_v30 }
  0x98   :  { %v130_v34 = vadd.f32 1.0, %v384_v31 }
  0x99   :  { %v386_v35 = vpop.eup %385  ;;  %389 = vpow2.f32 %v360_v32  ;;  %v357_v36 = vmul.f32 -1.442695, %v521_v33 }
  0x9a   :  { %v388_v37 = vpop.eup %387  ;;  %391 = vrcp.f32 %v130_v34  ;;  %v127_v39 = vadd.f32 1.0, %v386_v35  ;;  %v203_v57 = vand.u32 2147483647, %v130_v34  ;;  %v205_v58 = vand.u32 2147483648, %v130_v34 }
  0x9b   :  { %v135_v38 = vmul.f32 %v388_v37, %v126_v27  ;;  %393 = vpow2.f32 %v357_v36  ;;  %vm140_vm2 = vweird.f32 %v388_v37  ;;  %vm199_vm6 = vweird.f32 %v130_v34 }
  0x9c   :  { %v96_v41 = vpop.f32.mrf.mxu2  ;;  %395 = vrcp.f32 %v127_v39  ;;  %vm530_vm3 = vmor %vm139_vm1, %vm140_vm2  ;;  %v158_v2 = vand.u32 2147483647, %v127_v39  ;;  %v160_v3 = vand.u32 2147483648, %v127_v39  ;;  %vm154_vm7 = vweird.f32 %v127_v39 }
  0x9d   :  { %v136_v42 = vsub.f32 1.0, %v135_v38  ;;  %v525_v44 = vadd.f32 %v490_v12, %v96_v41  ;;  %vm545_vm9 = vcmp.eq.f32.partialorder %v203_v57, 8.507059e+37  ;;  %v206_v13 = vor.u32 1.1754944e-38, %v205_v58 }
  0x9e   :  { %v87_v45 = vpop.f32.mrf.mxu0  ;;  %vm553_vm11 = vcmp.eq.f32.partialorder %v158_v2, 8.507059e+37 }
  0x9f   :  { %v390_v46 = vpop.eup %389  ;;  %v137_v47 = vmul.f32 %v388_v37, %v136_v42  ;;  %v528_v48 = vadd.f32 %v490_v12, %v87_v45  ;;  %v361_v53 = vmul.f32 -1.442695, %v525_v44 }
  0xa0   :  { %v392_v49 = vpop.eup %391  ;;  %v534_v52 = vadd.f32 1.0, %v390_v46 }
  0xa1   :  { %v394_v54 = vpop.eup %393  ;;  %v138_v55 = vadd.f32 %v388_v37, %v137_v47  ;;  %v195_v56 = vmul.f32 %v392_v49, %v130_v34  ;;  %v358_v59 = vmul.f32 -1.442695, %v528_v48  ;;  %vm200_vm5 = vweird.f32 %v392_v49 }
  0xa2   :  { %397 = vrcp.f32 %v534_v52  ;;  %v396_v60 = vpop.eup %395  ;;  %v541_v63 = vadd.f32 1.0, %v394_v54  ;;  %vm201_vm10 = vmor %vm199_vm6, %vm200_vm5  ;;  %v218_v20 = vand.u32 2147483647, %v534_v52  ;;  %v220_v26 = vand.u32 2147483648, %v534_v52 }
  0xa3   :  { %v142_v61 = vsel %vm530_vm3, %v388_v37, %v138_v55  ;;  %v196_v62 = vsub.f32 1.0, %v195_v56  ;;  %399 = vpow2.f32 %v361_v53  ;;  %v150_v1 = vmul.f32 %v396_v60, %v127_v39 }
  0xa4   :  { %v147_v0 = vsel %vm144_vm4, %v146_v51, %v142_v61  ;;  %v99_v4 = vpop.f32.mrf.mxu2  ;;  %401 = vrcp.f32 %v541_v63  ;;  %vm155_vm8 = vweird.f32 %v396_v60  ;;  %vm169_vm13 = vweird.f32 %v541_v63 }
  0xa5   :  { %v254_v5 = vmul.f32 %v147_v0, %v499_v16  ;;  %v197_v6 = vmul.f32 %v392_v49, %v196_v62  ;;  %v151_v7 = vsub.f32 1.0, %v150_v1  ;;  %403 = vpow2.f32 %v358_v59  ;;  %vm558_vm12 = vmor %vm154_vm7, %vm155_vm8 }
  0xa6   :  { %v550_v10 = vadd.f32 %v490_v12, %v99_v4  ;;  %v161_v16 = vor.u32 1.1754944e-38, %v160_v3  ;;  %v173_v35 = vand.u32 2147483647, %v541_v63  ;;  %vm214_vm1 = vweird.f32 %v534_v52 }
  0xa7   :  { %v198_v8 = vadd.f32 %v392_v49, %v197_v6  ;;  %363 = vmatmul.msk.f32.vlgmr.msra.gmra.mxu1 %vm36_vm0, %v254_v5  ;;  %v152_v14 = vmul.f32 %v396_v60, %v151_v7  ;;  %v221_v43 = vor.u32 1.1754944e-38, %v220_v26  ;;  %vm219_vm3 = vcmp.eq.f32.partialorder %v218_v20, 8.507059e+37 }
  0xa8   :  { %v398_v11 = vpop.eup %397  ;;  %v362_v22 = vmul.f32 -1.442695, %v550_v10  ;;  %vm174_vm5 = vcmp.eq.f32.partialorder %v173_v35, 8.507059e+37 }
  0xa9   :  { %v400_v17 = vpop.eup %399  ;;  %v202_v18 = vsel %vm201_vm10, %v392_v49, %v198_v8  ;;  %v210_v12 = vmul.f32 %v398_v11, %v534_v52  ;;  %v153_v25 = vadd.f32 %v396_v60, %v152_v14  ;;  %vm215_vm14 = vweird.f32 %v398_v11 }
  0xaa   :  { %v207_v23 = vsel %vm545_vm9, %v206_v13, %v202_v18  ;;  %v568_v27 = vadd.f32 1.0, %v400_v17  ;;  %v402_v28 = vpop.eup %401  ;;  %405 = vpow2.f32 %v362_v22  ;;  %vm216_vm2 = vmor %vm214_vm1, %vm215_vm14 }
  0xab   :  { %v258_v30 = vmul.f32 %v207_v23, %v509_v21  ;;  %v211_v31 = vsub.f32 1.0, %v210_v12  ;;  %v157_v32 = vsel %vm558_vm12, %v396_v60, %v153_v25  ;;  %v165_v34 = vmul.f32 %v402_v28, %v541_v63  ;;  %v404_v36 = vpop.eup %403  ;;  %v380_v25 = vld [vmem:[%s639_s4] ss:$0 sm:$0xff] }
  0xac   :  { %407 = vrcp.f32 %v568_v27  ;;  %v162_v37 = vsel %vm553_vm11, %v161_v16, %v157_v32  ;;  %v175_v21 = vand.u32 2147483648, %v541_v63  ;;  %vm170_vm15 = vweird.f32 %v402_v28 }
  0xad   :  { %v212_v38 = vmul.f32 %v398_v11, %v211_v31  ;;  %367 = vmatmul.msk.f32.vlgmr.msra.gmra.mxu3 %vm36_vm0, %v258_v30  ;;  %v255_v39 = vmul.f32 %v162_v37, %v513_v24  ;;  %v166_v40 = vsub.f32 1.0, %v165_v34  ;;  %v129_v41 = vadd.f32 1.0, %v404_v36  ;;  %vm171_vm4 = vmor %vm169_vm13, %vm170_vm15 }
  0xae   :  { %v176_v49 = vor.u32 1.1754944e-38, %v175_v21  ;;  %v235_v60 = vand.u32 2147483648, %v568_v27  ;;  %v233_v62 = vand.u32 2147483647, %v568_v27  ;;  %vm229_vm7 = vweird.f32 %v568_v27 }
  0xaf   :  { %v213_v42 = vadd.f32 %v398_v11, %v212_v38  ;;  %v167_v45 = vmul.f32 %v402_v28, %v166_v40  ;;  %409 = vrcp.f32 %v129_v41  ;;  %364 = vmatmul.msk.f32.gmra.mxu1 %vm36_vm0, %v255_v39  ;;  %vm184_vm8 = vweird.f32 %v129_v41 }
  0xb0   :  { %v406_v46 = vpop.eup %405  ;;  %v188_v2 = vand.u32 2147483647, %v129_v41  ;;  %vm234_vm11 = vcmp.eq.f32.partialorder %v233_v62, 8.507059e+37 }
  0xb1   :  { %v217_v47 = vsel %vm216_vm2, %v398_v11, %v213_v42  ;;  %v168_v51 = vadd.f32 %v402_v28, %v167_v45  ;;  %v133_v53 = vadd.f32 1.0, %v406_v46 }
  0xb2   :  { %v408_v24 = vpop.eup %407  ;;  %v222_v50 = vsel %vm219_vm3, %v221_v43, %v217_v47  ;;  %vm189_vm13 = vcmp.eq.f32.partialorder %v188_v2, 8.507059e+37 }
  0xb3   :  { %v259_v52 = vmul.f32 %v222_v50, %v517_v29  ;;  %v225_v54 = vmul.f32 %v408_v24, %v568_v27  ;;  %v172_v55 = vsel %vm171_vm4, %v402_v28, %v168_v51  ;;  %411 = vrcp.f32 %v133_v53 }
  0xb4   :  { %v177_v56 = vsel %vm174_vm5, %v176_v49, %v172_v55  ;;  %vm230_vm6 = vweird.f32 %v408_v24  ;;  %v190_v29 = vand.u32 2147483648, %v129_v41  ;;  %v250_v14 = vand.u32 2147483648, %v133_v53 }
  0xb5   :  { %v226_v57 = vsub.f32 1.0, %v225_v54  ;;  %368 = vmatmul.msk.f32.gmra.mxu3 %vm36_vm0, %v259_v52  ;;  %v410_v58 = vpop.eup %409  ;;  %v256_v59 = vmul.f32 %v177_v56, %v521_v33  ;;  %vm231_vm10 = vmor %vm229_vm7, %vm230_vm6  ;;  %v236_v33 = vor.u32 1.1754944e-38, %v235_v60  ;;  %v248_v17 = vand.u32 2147483647, %v133_v53 }
  0xb6   :  { %v180_v63 = vmul.f32 %v410_v58, %v129_v41  ;;  %vm185_vm9 = vweird.f32 %v410_v58  ;;  %v191_v8 = vor.u32 1.1754944e-38, %v190_v29  ;;  %vm244_vm15 = vweird.f32 %v133_v53 }
  0xb7   :  { %v227_v61 = vmul.f32 %v408_v24, %v226_v57  ;;  %365 = vmatmul.msk.f32.gmra.mxu1 %vm36_vm0, %v256_v59  ;;  %vm186_vm12 = vmor %vm184_vm8, %vm185_vm9  ;;  %v251_v20 = vor.u32 1.1754944e-38, %v250_v14  ;;  %vm249_vm2 = vcmp.eq.f32.partialorder %v248_v17, 8.507059e+37 }
  0xb8   :  { %v181_v1 = vsub.f32 1.0, %v180_v63 }
  0xb9   :  { %v228_v0 = vadd.f32 %v408_v24, %v227_v61  ;;  %v412_v3 = vpop.eup %411 }
  0xba   :  { %v182_v5 = vmul.f32 %v410_v58, %v181_v1  ;;  %v240_v6 = vmul.f32 %v412_v3, %v133_v53  ;;  %vm245_vm14 = vweird.f32 %v412_v3 }
  0xbb   :  { %v232_v4 = vsel %vm231_vm10, %v408_v24, %v228_v0  ;;  %vm246_vm1 = vmor %vm244_vm15, %vm245_vm14 }
  0xbc   :  { %v237_v7 = vsel %vm234_vm11, %v236_v33, %v232_v4  ;;  %v183_v11 = vadd.f32 %v410_v58, %v182_v5  ;;  %v241_v13 = vsub.f32 1.0, %v240_v6 }
  0xbd   :  { %v260_v9 = vmul.f32 %v237_v7, %v525_v44 }
  0xbe   :  { %v187_v15 = vsel %vm186_vm12, %v410_v58, %v183_v11  ;;  %v242_v16 = vmul.f32 %v412_v3, %v241_v13 }
  0xbf   :  { %369 = vmatmul.msk.f32.gmra.mxu3 %vm36_vm0, %v260_v9  ;;  %v192_v18 = vsel %vm189_vm13, %v191_v8, %v187_v15 }
  0xc0   :  { %v257_v19 = vmul.f32 %v192_v18, %v528_v48  ;;  %v243_v12 = vadd.f32 %v412_v3, %v242_v16 }
  0xc2   :  { %v247_v22 = vsel %vm246_vm1, %v412_v3, %v243_v12  ;;  %366 = vmatmul.msk.f32.gmra.mxu1 %vm36_vm0, %v257_v19 }
  0xc3   :  { %v252_v44 = vsel %vm249_vm2, %v251_v20, %v247_v22 }
  0xc4   :  { %v261_v23 = vmul.f32 %v252_v44, %v550_v10 }
  0xc7   :  { %370 = vmatmul.msk.f32.gmra.mxu3 %vm36_vm0, %v261_v23 }
 0x124   :  { %v311_v26 = vpop.f32.mrf.mxu1 }
 0x125   :  { %v312_v27 = vadd.f32 %v380_v25, %v311_v26 }
 0x127   :  { %335 = vst.msk [vmem:[%s641_s5] sm:$0xff] %vm36_vm0, %v312_v27 }
 0x12c   :  { %v314_v48 = vpop.f32.mrf.mxu1 }
 0x12d   :  { %v315_v28 = vadd.f32 %v380_v25, %v314_v48 }
 0x12f   :  { %336 = vst.msk [vmem:[%s641_s5 + $0x8] sm:$0xff] %vm36_vm0, %v315_v28 }
 0x130   :  { %v323_v10 = vpop.f32.mrf.mxu3 }
 0x131   :  { %v324_v30 = vadd.f32 %v380_v25, %v323_v10 }
 0x133   :  { %339 = vst.msk [vmem:[%s641_s5 + $0x20] sm:$0xff] %vm36_vm0, %v324_v30 }
 0x134   :  { %v317_v31 = vpop.f32.mrf.mxu1 }
 0x135   :  { %v318_v32 = vadd.f32 %v380_v25, %v317_v31 }
 0x137   :  { %337 = vst.msk [vmem:[%s641_s5 + $0x10] sm:$0xff] %vm36_vm0, %v318_v32 }
 0x138   :  { %v326_v34 = vpop.f32.mrf.mxu3 }
 0x139   :  { %v327_v35 = vadd.f32 %v380_v25, %v326_v34 }
 0x13b   :  { %340 = vst.msk [vmem:[%s641_s5 + $0x28] sm:$0xff] %vm36_vm0, %v327_v35 }
 0x13f   :  { %v320_v36 = vpop.f32.mrf.mxu1 }
 0x140   :  { %v321_v37 = vadd.f32 %v380_v25, %v320_v36 }
 0x142   :  { %v329_v38 = vpop.f32.mrf.mxu3  ;;  %338 = vst.msk [vmem:[%s641_s5 + $0x18] sm:$0xff] %vm36_vm0, %v321_v37 }
 0x143   :  { %v330_v21 = vadd.f32 %v380_v25, %v329_v38 }
 0x145   :  { %341 = vst.msk [vmem:[%s641_s5 + $0x30] sm:$0xff] %vm36_vm0, %v330_v21 }
 0x14a   :  { %v332_v39 = vpop.f32.mrf.mxu3 }
 0x14b   :  { %v333_v40 = vadd.f32 %v380_v25, %v332_v39 }
 0x14d   :  { %342 = vst.msk [vmem:[%s641_s5 + $0x38] sm:$0xff] %vm36_vm0, %v333_v40 }

</bundles_post_ra>
